<compile_context>
chip_gen: v6e
topology: v6e:2x2x1
jax: 0.10.0
libtpu: 0.0.40
codegen_flags: <defaults>
</compile_context>

<pallas_src>
import jax
import jax.numpy as jnp
from jax.experimental import pallas as pl
from jax.experimental.pallas import tpu as pltpu

_LANE = 128
_SUBLANE = 8


def _round_up(x: int, m: int) -> int:
    return -(-x // m) * m


def _make_oce_kernel(temperature: float, tile_rows: int):
    neg_inv_temp = -1.0 / float(temperature)
    groups = tile_rows // _SUBLANE

    def oce_kernel(a_ref, r_ref, oce_ref, reg_ref):
        a = a_ref[...]                                    # (D, TR, 128) f32
        r = r_ref[...]

        diff = a - r
        dist_sq = jnp.sum(diff * diff, axis=0)            # (TR, 128): D-1 VPU adds
        oce_tile = 1.0 - jnp.exp(dist_sq * neg_inv_temp)  # (TR, 128), exp on EUP

        reg_tile = jnp.sqrt(jnp.sum(a * a, axis=0))       # (TR, 128) = ||anchor||_2

        # Reduce (TR, 128) -> (8, 128) per-tile partials with sublane-preserving
        # VPU adds (no cross-lane XLU reduce inside the kernel); the final tiny
        # reduction happens in the wrapper.
        oce_ref[0] = oce_tile.reshape(groups, _SUBLANE, _LANE).sum(axis=0)
        reg_ref[0] = reg_tile.reshape(groups, _SUBLANE, _LANE).sum(axis=0)

    return oce_kernel


def oce_loss(anchor_embedding, reference_embedding, *, temperature,
             regularization_weight, target_tile_rows=2048):
    """Pallas implementation of OCELoss.forward.

    anchor_embedding, reference_embedding: (N, D) arrays.
    Returns (loss, oce_loss, regularization_loss) as float32 scalars.
    """
    assert anchor_embedding.shape == reference_embedding.shape
    n, d = anchor_embedding.shape

    # Lane-dense layout: N -> (rows, 128).  Pick num_tiles first, then the tile
    # row count, so padding waste is at most one sublane group, not a full tile.
    rows = max(1, -(-n // _LANE))                         # ceil(N / 128)
    num_tiles = -(-rows // int(target_tile_rows))         # ceil(rows / target)
    tr = _round_up(-(-rows // num_tiles), _SUBLANE)       # tile rows, multiple of 8
    rows_pad = num_tiles * tr
    n_pad = rows_pad * _LANE

    def prep(x):
        x = x.astype(jnp.float32).T                       # (D, N): N lane-dense
        if n_pad != n:
            # Zero padding: dist = 0 -> 1 - exp(0) = 0; ||0|| = 0 -> contributes 0.
            x = jnp.pad(x, ((0, 0), (0, n_pad - n)))
        return x.reshape(d, rows_pad, _LANE)

    a3 = prep(anchor_embedding)
    r3 = prep(reference_embedding)                        # .detach() is a no-op in fwd

    kernel = _make_oce_kernel(temperature, tr)

    in_spec = pl.BlockSpec((d, tr, _LANE), lambda i: (0, i, 0))
    out_spec = pl.BlockSpec((1, _SUBLANE, _LANE), lambda i: (i, 0, 0))

    oce_p, reg_p = pl.pallas_call(
        kernel,
        out_shape=(
            jax.ShapeDtypeStruct((num_tiles, _SUBLANE, _LANE), jnp.float32),
            jax.ShapeDtypeStruct((num_tiles, _SUBLANE, _LANE), jnp.float32),
        ),
        grid_spec=pltpu.PrefetchScalarGridSpec(
            num_scalar_prefetch=0,
            grid=(num_tiles,),
            in_specs=[in_spec, in_spec],
            out_specs=(out_spec, out_spec),
        ),
        compiler_params=pltpu.CompilerParams(
            dimension_semantics=("parallel",),
        ),
    )(a3, r3)

    # Final tiny reductions over per-tile partials (XLA tree-sum).
    oce_l = jnp.sum(oce_p)
    reg_l = jnp.float32(regularization_weight) * jnp.sum(reg_p)
    loss = oce_l + reg_l
    return loss, oce_l, reg_l


def _reference(anchor, reference, temperature, regularization_weight):
    a = anchor.astype(jnp.float32)
    r = reference.astype(jnp.float32)
    dist = jnp.linalg.norm(a - r, ord=2, axis=-1)
    oce = jnp.sum(1.0 - jnp.exp(-(dist ** 2) / temperature))
    reg = regularization_weight * jnp.sum(jnp.linalg.norm(a, ord=2, axis=-1))
    return oce + reg, oce, reg


if __name__ == "__main__":
    # Module hyperparameters (deterministic, in-script).
    temperature = 10.0
    regularization_weight = 1e-5
    num_spatial_dims = 2          # embedding dim == num_spatial_dims for OCE
    # density / device only affect sampling / placement upstream, not forward math.

    # Small example: 256 sampled anchor/reference pairs, 2-D embeddings.
    N, D = 256, num_spatial_dims
    key = jax.random.PRNGKey(0)
    k_a, k_r = jax.random.split(key)
    anchor = jax.random.normal(k_a, (N, D), dtype=jnp.float32)
    reference = jax.random.normal(k_r, (N, D), dtype=jnp.float32)

    loss, oce_l, reg_l = oce_loss(
        anchor, reference,
        temperature=temperature,
        regularization_weight=regularization_weight,
    )
    jax.block_until_ready((loss, oce_l, reg_l))

    ref_loss, ref_oce, ref_reg = _reference(
        anchor, reference, temperature, regularization_weight)
    assert jnp.allclose(loss, ref_loss, rtol=1e-5, atol=1e-5)
    assert jnp.allclose(oce_l, ref_oce, rtol=1e-5, atol=1e-5)
    assert jnp.allclose(reg_l, ref_reg, rtol=1e-5, atol=1e-5)

    print("KERNEL_OK")
</pallas_src>

<mosaic_0001>
module attributes {stable_mosaic.version = 11 : i64} {
  func.func @oce_kernel(%arg0: i32, %arg1: memref<2x8x128xf32, #tpu.memory_space<vmem>>, %arg2: memref<2x8x128xf32, #tpu.memory_space<vmem>>, %arg3: memref<1x8x128xf32, #tpu.memory_space<vmem>>, %arg4: memref<1x8x128xf32, #tpu.memory_space<vmem>>) attributes {dimension_semantics = [#tpu.dimension_semantics<parallel>], iteration_bounds = array<i64: 1>, scalar_prefetch = 0 : i64, scratch_operands = 0 : i64, tpu.core_type = #tpu.core_type<tc>, window_params = [{transform_indices = @transform_0, window_bounds = array<i64: 2, 8, 128>}, {transform_indices = @transform_1, window_bounds = array<i64: 2, 8, 128>}, {transform_indices = @transform_2, window_bounds = array<i64: 1, 8, 128>}, {transform_indices = @transform_3, window_bounds = array<i64: 1, 8, 128>}]} {
    %c0 = arith.constant 0 : index
    %c0_0 = arith.constant 0 : index
    %c0_1 = arith.constant 0 : index
    %0 = vector.load %arg1[%c0, %c0_0, %c0_1] : memref<2x8x128xf32, #tpu.memory_space<vmem>>, vector<2x8x128xf32>
    %c0_2 = arith.constant 0 : index
    %c0_3 = arith.constant 0 : index
    %c0_4 = arith.constant 0 : index
    %1 = vector.load %arg2[%c0_2, %c0_3, %c0_4] : memref<2x8x128xf32, #tpu.memory_space<vmem>>, vector<2x8x128xf32>
    %2 = arith.subf %0, %1 : vector<2x8x128xf32>
    %3 = arith.mulf %2, %2 : vector<2x8x128xf32>
    %cst = arith.constant dense<0.000000e+00> : vector<8x128xf32>
    %4 = vector.multi_reduction <add>, %3, %cst [0] : vector<2x8x128xf32> to vector<8x128xf32>
    %cst_5 = arith.constant -1.000000e-01 : f32
    %5 = vector.broadcast %cst_5 : f32 to vector<8x128xf32>
    %6 = arith.mulf %4, %5 : vector<8x128xf32>
    %7 = math.exp %6 : vector<8x128xf32>
    %cst_6 = arith.constant 1.000000e+00 : f32
    %8 = vector.broadcast %cst_6 : f32 to vector<8x128xf32>
    %9 = arith.subf %8, %7 : vector<8x128xf32>
    %10 = arith.mulf %0, %0 : vector<2x8x128xf32>
    %cst_7 = arith.constant dense<0.000000e+00> : vector<8x128xf32>
    %11 = vector.multi_reduction <add>, %10, %cst_7 [0] : vector<2x8x128xf32> to vector<8x128xf32>
    %12 = math.sqrt %11 : vector<8x128xf32>
    %13 = vector.shape_cast %9 : vector<8x128xf32> to vector<1x8x128xf32>
    %cst_8 = arith.constant dense<0.000000e+00> : vector<8x128xf32>
    %14 = vector.multi_reduction <add>, %13, %cst_8 [0] : vector<1x8x128xf32> to vector<8x128xf32>
    %c0_9 = arith.constant 0 : index
    %c0_10 = arith.constant 0 : index
    %c0_11 = arith.constant 0 : index
    %15 = vector.load %arg3[%c0_9, %c0_10, %c0_11] : memref<1x8x128xf32, #tpu.memory_space<vmem>>, vector<1x8x128xf32>
    %16 = vector.shape_cast %15 : vector<1x8x128xf32> to vector<8x128xf32>
    %17 = vector.shape_cast %14 : vector<8x128xf32> to vector<1x8x128xf32>
    tpu.vector_store %arg3[%c0_9, %c0_10, %c0_11], %17 {strides = array<i32>} : memref<1x8x128xf32, #tpu.memory_space<vmem>>, vector<1x8x128xf32>,
    %18 = vector.shape_cast %12 : vector<8x128xf32> to vector<1x8x128xf32>
    %cst_12 = arith.constant dense<0.000000e+00> : vector<8x128xf32>
    %19 = vector.multi_reduction <add>, %18, %cst_12 [0] : vector<1x8x128xf32> to vector<8x128xf32>
    %c0_13 = arith.constant 0 : index
    %c0_14 = arith.constant 0 : index
    %c0_15 = arith.constant 0 : index
    %20 = vector.load %arg4[%c0_13, %c0_14, %c0_15] : memref<1x8x128xf32, #tpu.memory_space<vmem>>, vector<1x8x128xf32>
    %21 = vector.shape_cast %20 : vector<1x8x128xf32> to vector<8x128xf32>
    %22 = vector.shape_cast %19 : vector<8x128xf32> to vector<1x8x128xf32>
    tpu.vector_store %arg4[%c0_13, %c0_14, %c0_15], %22 {strides = array<i32>} : memref<1x8x128xf32, #tpu.memory_space<vmem>>, vector<1x8x128xf32>,
    return
  }
  func.func @transform_0(%arg0: i32) -> (i32, i32, i32) {
    %c0_i32 = arith.constant 0 : i32
    %c0_i32_0 = arith.constant 0 : i32
    %c0_i32_1 = arith.constant 0 : i32
    return %c0_i32, %arg0, %c0_i32_0 : i32, i32, i32
  }
  func.func @transform_1(%arg0: i32) -> (i32, i32, i32) {
    %c0_i32 = arith.constant 0 : i32
    %c0_i32_0 = arith.constant 0 : i32
    %c0_i32_1 = arith.constant 0 : i32
    return %c0_i32, %arg0, %c0_i32_0 : i32, i32, i32
  }
  func.func @transform_2(%arg0: i32) -> (i32, i32, i32) {
    %c0_i32 = arith.constant 0 : i32
    %c0_i32_0 = arith.constant 0 : i32
    %c0_i32_1 = arith.constant 0 : i32
    return %arg0, %c0_i32, %c0_i32_0 : i32, i32, i32
  }
  func.func @transform_3(%arg0: i32) -> (i32, i32, i32) {
    %c0_i32 = arith.constant 0 : i32
    %c0_i32_0 = arith.constant 0 : i32
    %c0_i32_1 = arith.constant 0 : i32
    return %arg0, %c0_i32, %c0_i32_0 : i32, i32, i32
  }
}

</mosaic_0001>

<bundles_post_ra>
// kernel: tpu_custom_call.1
= control target key start
LH: loop header
LB: loop body
LE: loop exit
PB: predicated region body
PF: predicated region fallthrough
CT: control target
= control target key end

     0   :  { %9 = vsyncpa [#allocation3], 0  ;;  %s236_s0 = inlined_call_operand.hbm [shape: f32[2,8,128], index: 0, kind: input, shape index: {}]   ;;  %s237_s1 = inlined_call_operand.hbm [shape: f32[2,8,128], index: 1, kind: input, shape index: {}]   ;;  %s238_s2 = inlined_call_operand.hbm [shape: f32[1,8,128], index: 2, kind: output, shape index: {0}]   ;;  %s239_s3 = inlined_call_operand.hbm [shape: f32[1,8,128], index: 3, kind: output, shape index: {1}]  }
   0x1   :  { %10 = vsyncpa [#allocation6], 0 }
   0x2   :  { %11 = vsyncpa [#allocation4], 0 }
   0x3   :  { %12 = vsyncpa [#allocation9], 0  ;;  %s198_s12 = smov [#allocation2]  }
   0x4   :  { %s18_s13 = sshll.u32 %s198_s12, 4  ;;  %s19_s13 = int_to_ptr.vmem [resolvable:$true] %s18_s13 }
   0x5   :  { %s118_s14 = scalar_lea.vmem %s19_s13, 256  ;;  %p123_p1 = scmp.lt.s32.totalorder %s19_s13, %s19_s13 }
   0x6   :  { %p119_p0 = scmp.ne.s32.totalorder %s19_s13, %s118_s14  ;;  %p124_p2 = scmp.lt.s32.totalorder %s118_s14, %s118_s14 }
   0x8   :  { %p125_p3 = por %p124_p2, %p123_p1 }
   0xa   :  { %p126_p4 = pnand %p125_p3, %p119_p0 }
   0xc   :  { %129 = shalt.err (!%p126_p4)
}
   0xd   :  { %s199_s15 = smov 128   ;;  %s200_s16 = smov 8  }
   0xe   :  { %24 = dma.hbm_to_vmem [thread:$0]  %s236_s0, 256, %s19_s13, [#allocation3], %s199_s15, %s199_s15, %s200_s16  }
   0xf   :  { %s201_s19 = smov [#allocation5]  }
  0x10   :  { %s30_s20 = sshll.u32 %s201_s19, 4  ;;  %s31_s20 = int_to_ptr.vmem [resolvable:$true] %s30_s20 }
  0x11   :  { %s138_s21 = scalar_lea.vmem %s31_s20, 256  ;;  %p143_p6 = scmp.lt.s32.totalorder %s31_s20, %s31_s20 }
  0x12   :  { %p139_p5 = scmp.ne.s32.totalorder %s31_s20, %s138_s21  ;;  %p144_p7 = scmp.lt.s32.totalorder %s138_s21, %s138_s21 }
  0x14   :  { %p145_p8 = por %p144_p7, %p143_p6 }
  0x16   :  { %p146_p9 = pnand %p145_p8, %p139_p5 }
  0x18   :  { %149 = shalt.err (!%p146_p9)
}
  0x19   :  { %36 = dma.hbm_to_vmem [thread:$0]  %s237_s1, 256, %s31_s20, [#allocation6], %s199_s15, %s199_s15, %s200_s16  }
  0x1a   :  { %190 = dma.done.wait [#allocation3], 256  }
  0x1b   :  { %191 = vsyncadd [#allocation3], 4294967040 }
  0x1c   :  { %192 = dma.done.wait [#allocation6], 256  }
  0x1d   :  { %193 = vsyncadd [#allocation6], 4294967040  ;;  %v43_v0 = vld [vmem:[#allocation2] sm:$0xff]  ;;  %v44_v1 = vld [vmem:[#allocation2 + $0x8] sm:$0xff]  ;;  %s202_s0 = smov [#allocation8]   ;;  %s203_s24 = smov [#allocation7]  }
  0x1e   :  { %v45_v2 = vld [vmem:[#allocation5] sm:$0xff]  ;;  %v46_v3 = vld [vmem:[#allocation5 + $0x8] sm:$0xff]  ;;  %v56_v5 = vmul.f32 %v43_v0, %v43_v0  ;;  %v57_v6 = vmul.f32 %v44_v1, %v44_v1  ;;  %s86_s1 = sshll.u32 %s202_s0, 4  ;;  %s76_s25 = sshll.u32 %s203_s24, 4  ;;  %s87_s1 = int_to_ptr.vmem [resolvable:$true] %s86_s1  ;;  %s77_s25 = int_to_ptr.vmem [resolvable:$true] %s76_s25 }
  0x1f   :  { %v47_v4 = vsub.f32 %v43_v0, %v45_v2  ;;  %v48_v7 = vsub.f32 %v44_v1, %v46_v3  ;;  %s150_s26 = scalar_lea.vmem %s87_s1, 128  ;;  %p155_p11 = scmp.lt.s32.totalorder %s87_s1, %s87_s1 }
  0x20   :  { %v58_v9 = vadd.f32 %v57_v6, %v56_v5  ;;  %p151_p10 = scmp.ne.s32.totalorder %s87_s1, %s150_s26  ;;  %p156_p12 = scmp.lt.s32.totalorder %s150_s26, %s150_s26 }
  0x21   :  { %v49_v8 = vmul.f32 %v47_v4, %v47_v4  ;;  %v50_v10 = vmul.f32 %v48_v7, %v48_v7 }
  0x22   :  { %106 = vrsqrt.f32 %v58_v9  ;;  %vm61_vm0 = vcmp.eq.f32.partialorder %v58_v9, inf  ;;  %v64_v15 = vand.u32 2147483648, %v58_v9  ;;  %vm63_vm1 = vcmp.eq.f32.partialorder %v58_v9, 0.0  ;;  %p157_p13 = por %p156_p12, %p155_p11 }
  0x23   :  { %v51_v11 = vadd.f32 %v50_v10, %v49_v8 }
  0x24   :  { %p158_p0 = pnand %p157_p13, %p151_p10 }
  0x25   :  { %v52_v12 = vmul.f32 -0.1, %v51_v11 }
  0x27   :  { %v53_v13 = vmul.f32 1.442695, %v52_v12 }
  0x29   :  { %108 = vpow2.f32 %v53_v13 }
  0x2f   :  { %v107_v14 = vpop.eup %106 }
  0x30   :  { %v60_v16 = vmul.f32 %v107_v14, %v58_v9 }
  0x32   :  { %v62_v17 = vsel %vm61_vm0, %v58_v9, %v60_v16 }
  0x33   :  { %v65_v18 = vsel %vm63_vm1, %v64_v15, %v62_v17 }
  0x34   :  { %69 = vst [vmem:[#allocation8] sm:$0xff] %v65_v18 }
  0x35   :  { %161 = shalt.err (!%p158_p0)
}
  0x36   :  { %89 = dma.vmem_to_hbm [thread:$0]  %s87_s1, 128, %s239_s3, [#allocation9]   ;;  %v109_v19 = vpop.eup %108 }
  0x37   :  { %v55_v20 = vsub.f32 1.0, %v109_v19  ;;  %s170_s29 = scalar_lea.vmem %s77_s25, 128  ;;  %p175_p2 = scmp.lt.s32.totalorder %s77_s25, %s77_s25 }
  0x38   :  { %p171_p1 = scmp.ne.s32.totalorder %s77_s25, %s170_s29  ;;  %p176_p3 = scmp.lt.s32.totalorder %s170_s29, %s170_s29 }
  0x39   :  { %67 = vst [vmem:[#allocation7] sm:$0xff] %v55_v20 }
  0x3a   :  { %p177_p4 = por %p176_p3, %p175_p2 }
  0x3c   :  { %p178_p5 = pnand %p177_p4, %p171_p1 }
  0x3e   :  { %181 = shalt.err (!%p178_p5)
}
  0x3f   :  { %79 = dma.vmem_to_hbm [thread:$0]  %s77_s25, 128, %s238_s2, [#allocation4]  }
  0x40   :  { %194 = dma.done.wait [#allocation4], 128  }
  0x41   :  { %195 = vsyncadd [#allocation4], 4294967168 }
  0x42   :  { %196 = dma.done.wait [#allocation9], 128  }
  0x43   :  { %197 = vsyncadd [#allocation9], 4294967168 }
  0x44   :  { %96 = vsyncpa [#allocation3], 1 }
  0x45   :  { %97 = vsyncpa [#allocation6], 1 }
  0x46   :  { %98 = vsyncpa [#allocation4], 1 }
  0x47   :  { %99 = vsyncpa [#allocation9], 1 }

</bundles_post_ra>
